<compile_context>
chip_gen: v6e
topology: v6e:2x2x1
jax: 0.10.0
libtpu: 0.0.40
codegen_flags: <defaults>
</compile_context>

<pallas_src>
import functools

import jax
import jax.numpy as jnp
from jax.experimental import pallas as pl
from jax.experimental.pallas import tpu as pltpu


# ---------------------------------------------------------------------------
# In-kernel helpers
# ---------------------------------------------------------------------------

def _finalize_scale(ss, gamma_f32, *, channels, groups):
    """(1, 1, D) per-lane sum-of-squares -> per-lane scale  gamma * Nx + 1."""
    d = ss.shape[-1]
    if groups > 1:
        # Lane j holds a partial sum belonging to channel (j % channels).
        # Fold the `groups` packed spatial positions back to per-channel
        # totals AND broadcast them back across all D lanes with one tiny MXU
        # matmul:  R[i, j] = 1.0 iff (i % C) == (j % C).
        li = jax.lax.broadcasted_iota(jnp.int32, (d, d), 0) % channels
        lj = jax.lax.broadcasted_iota(jnp.int32, (d, d), 1) % channels
        fold = (li == lj).astype(jnp.float32)
        ss = jnp.dot(ss[0], fold, preferred_element_type=jnp.float32)[None]
    gx = jnp.sqrt(ss)                                    # (1, 1, D)
    # Each channel value appears `groups` times, so the lane mean equals the
    # channel mean of Gx.
    mean_gx = jnp.mean(gx, axis=-1, keepdims=True)       # (1, 1, 1)
    inv = pl.reciprocal(mean_gx + 1e-6, approx=False)    # exact, tiny tensor
    # gamma * Nx + 1 folds the "+ x" residual into a single FMA later.
    return gamma_f32 * (gx * inv) + 1.0


# ---------------------------------------------------------------------------
# Kernels
# ---------------------------------------------------------------------------

def _grn_fused_kernel(x_ref, gamma_ref, beta_ref, o_ref, *, channels, groups):
    """Fused single-pass GRN for one sample.  x_ref/o_ref: (1, P, D)."""
    x = x_ref[...].astype(jnp.float32)                   # (1, P, D)
    ss = jnp.sum(x * x, axis=1, keepdims=True)           # (1, 1, D) sublane reduce
    scale = _finalize_scale(ss, gamma_ref[...].astype(jnp.float32),
                            channels=channels, groups=groups)
    bias = beta_ref[...].astype(jnp.float32)
    # Re-read x from VMEM (cheap) so the elementwise pass has a short f32
    # live range instead of keeping the reduction slab alive.
    x1 = x_ref[...].astype(jnp.float32)
    o_ref[...] = (x1 * scale + bias).astype(o_ref.dtype)


def _grn_scale_reduce_kernel(x_ref, gamma_ref, scale_ref, *,
                             channels, groups, valid_p):
    """Two-pass, pass 1: accumulate sum(x^2) over P-tiles; emit `scale` in the
    last-tile epilogue so no XLA math is needed between the two passes.

    x_ref: (1, p_tile, D)   gamma_ref: (1, 1, D)   scale_ref: (1, 1, D) f32
    """
    t = pl.program_id(1)

    @pl.when(t == 0)
    def _init():
        scale_ref[...] = jnp.zeros_like(scale_ref)

    x = x_ref[...].astype(jnp.float32)
    p_tile = x.shape[1]
    if valid_p % p_tile != 0:
        # Ragged last tile: out-of-bounds rows of the block hold unspecified
        # data -> select them to zero (select, not multiply, is NaN-safe).
        row = jax.lax.broadcasted_iota(jnp.int32, x.shape, 1) + t * p_tile
        x = jnp.where(row < valid_p, x, 0.0)
    scale_ref[...] += jnp.sum(x * x, axis=1, keepdims=True)

    @pl.when(t == pl.num_programs(1) - 1)
    def _finalize():
        scale_ref[...] = _finalize_scale(
            scale_ref[...], gamma_ref[...].astype(jnp.float32),
            channels=channels, groups=groups)


def _grn_apply_kernel(x_ref, scale_ref, beta_ref, o_ref):
    """Two-pass, pass 2: lane-dense single FMA  y = x * scale + beta.

    Partial edge tiles: Pallas drops writes outside the array, so no masking.
    """
    x = x_ref[...].astype(jnp.float32)
    o_ref[...] = (x * scale_ref[...] +
                  beta_ref[...].astype(jnp.float32)).astype(o_ref.dtype)


# ---------------------------------------------------------------------------
# Wrapper / dispatch
# ---------------------------------------------------------------------------

def _vmem_capacity_bytes():
    try:
        cap = getattr(pltpu.get_tpu_info(), "vmem_capacity_bytes", None)
        if cap:
            return int(cap)
    except Exception:
        pass
    return 128 * 1024 * 1024


def grn2d(x, gamma, beta, *, p_tile=None, force_two_pass=False):
    """GRN_2d forward.  x: (N, H, W, C); gamma, beta: (1, 1, 1, C)."""
    N, H, W, C = x.shape
    assert gamma.shape == (1, 1, 1, C) and beta.shape == (1, 1, 1, C)
    HW = H * W

    # ---- lane-dense view: free reshapes only (no HBM transpose / pad) ------
    groups = 1
    if C < 128 and 128 % C == 0:
        k = 128 // C
        if HW % k == 0:
            groups = k                    # pack k spatial positions per lane row
    D = groups * C
    P = HW // groups
    x_v = x.reshape(N, P, D)              # contiguous -> free
    gamma_r = gamma.reshape(1, 1, C)
    beta_r = beta.reshape(1, 1, C)
    if groups > 1:
        # Lane j corresponds to channel (j % C); tiling matches that order.
        gamma_r = jnp.tile(gamma_r, (1, 1, groups))
        beta_r = jnp.tile(beta_r, (1, 1, groups))

    # ---- generation-aware VMEM budgets --------------------------------------
    vmem_cap = _vmem_capacity_bytes()
    small_vmem = vmem_cap <= 96 * 1024 * 1024            # v7x-like (64 MiB)
    if small_vmem:
        fused_budget, fused_limit = 36 << 20, 44 << 20
        tiled_limit, tile_target = 40 << 20, 4 << 20
    else:                                                # v5e / v6e (128 MiB)
        fused_budget, fused_limit = 80 << 20, 96 << 20
        tiled_limit, tile_target = 64 << 20, 2 << 20

    itemsize = jnp.dtype(x.dtype).itemsize
    d_pad = int(pl.cdiv(D, 128) * 128)                   # VMEM lane padding
    p_pad = int(pl.cdiv(P, 8) * 8)                       # VMEM sublane padding
    slab_vmem = p_pad * d_pad
    # Pipelined footprint: double-buffered in + out slabs plus f32 temporaries.
    footprint = 4 * slab_vmem * itemsize + 2 * slab_vmem * 4

    use_fused = (footprint <= fused_budget) and not force_two_pass
    # v7x megacore: fused grid=(1,) would idle one TensorCore for N == 1.
    if small_vmem and N == 1 and slab_vmem * itemsize >= (2 << 20):
        use_fused = False

    if use_fused:
        y_v = pl.pallas_call(
            functools.partial(_grn_fused_kernel, channels=C, groups=groups),
            out_shape=jax.ShapeDtypeStruct((N, P, D), x.dtype),
            grid_spec=pltpu.PrefetchScalarGridSpec(
                num_scalar_prefetch=0,
                grid=(N,),
                in_specs=[
                    pl.BlockSpec((1, P, D), lambda n: (n, 0, 0)),
                    pl.BlockSpec((1, 1, D), lambda n: (0, 0, 0)),
                    pl.BlockSpec((1, 1, D), lambda n: (0, 0, 0)),
                ],
                out_specs=pl.BlockSpec((1, P, D), lambda n: (n, 0, 0)),
            ),
            compiler_params=pltpu.CompilerParams(
                dimension_semantics=("parallel",),
                vmem_limit_bytes=fused_limit),
        )(x_v, gamma_r, beta_r)
    else:
        if p_tile is None:
            rows = max(8, tile_target // max(d_pad * 4, 1))
            p_tile = P if rows >= P else (rows // 8) * 8
        p_tile = int(p_tile)
        assert p_tile == P or p_tile % 8 == 0, \
            "p_tile must be a multiple of 8 (sublanes) or equal to P"
        n_t = int(pl.cdiv(P, p_tile))

        # Pass 1: per-lane sum of squares -> per-lane scale (N, 1, D) f32.
        scale = pl.pallas_call(
            functools.partial(_grn_scale_reduce_kernel, channels=C,
                              groups=groups, valid_p=P),
            out_shape=jax.ShapeDtypeStruct((N, 1, D), jnp.float32),
            grid_spec=pltpu.PrefetchScalarGridSpec(
                num_scalar_prefetch=0,
                grid=(N, n_t),
                in_specs=[
                    pl.BlockSpec((1, p_tile, D), lambda n, t: (n, t, 0)),
                    pl.BlockSpec((1, 1, D), lambda n, t: (0, 0, 0)),
                ],
                out_specs=pl.BlockSpec((1, 1, D), lambda n, t: (n, 0, 0)),
            ),
            compiler_params=pltpu.CompilerParams(
                dimension_semantics=("parallel", "arbitrary"),
                vmem_limit_bytes=tiled_limit),
        )(x_v, gamma_r)

        # Pass 2: fully parallel lane-dense FMA (edge tiles clipped by Pallas).
        y_v = pl.pallas_call(
            _grn_apply_kernel,
            out_shape=jax.ShapeDtypeStruct((N, P, D), x.dtype),
            grid_spec=pltpu.PrefetchScalarGridSpec(
                num_scalar_prefetch=0,
                grid=(N, n_t),
                in_specs=[
                    pl.BlockSpec((1, p_tile, D), lambda n, t: (n, t, 0)),
                    pl.BlockSpec((1, 1, D), lambda n, t: (n, 0, 0)),
                    pl.BlockSpec((1, 1, D), lambda n, t: (0, 0, 0)),
                ],
                out_specs=pl.BlockSpec((1, p_tile, D), lambda n, t: (n, t, 0)),
            ),
            compiler_params=pltpu.CompilerParams(
                dimension_semantics=("parallel", "parallel"),
                vmem_limit_bytes=tiled_limit),
        )(x_v, scale, beta_r)

    return y_v.reshape(N, H, W, C)


def grn2d_ref(x, gamma, beta):
    """Pure-JAX reference mirroring the PyTorch forward."""
    xf = x.astype(jnp.float32)
    gx = jnp.sqrt(jnp.sum(xf * xf, axis=(1, 2), keepdims=True))
    nx = gx / (jnp.mean(gx, axis=-1, keepdims=True) + 1e-6)
    return (gamma.astype(jnp.float32) * (xf * nx) +
            beta.astype(jnp.float32) + xf).astype(x.dtype)


# ---------------------------------------------------------------------------
# Self-test
# ---------------------------------------------------------------------------

if __name__ == "__main__":
    key = jax.random.PRNGKey(0)

    def make_case(k, N, H, W, C):
        kx, kg, kb = jax.random.split(k, 3)
        x = jax.random.normal(kx, (N, H, W, C), dtype=jnp.float32)
        # Module __init__ uses zeros; use small values so the affine path is
        # actually exercised.
        gamma = 0.1 * jax.random.normal(kg, (1, 1, 1, C), dtype=jnp.float32)
        beta = 0.1 * jax.random.normal(kb, (1, 1, 1, C), dtype=jnp.float32)
        return x, gamma, beta

    grn_jit = jax.jit(grn2d, static_argnames=("p_tile", "force_two_pass"))

    k1, k2, k3, k4 = jax.random.split(key, 4)
    cases = []

    # 1) tiny C -> packed lane-dense fused path (groups=32, D=128).
    x, g, b = make_case(k1, 2, 16, 16, 4)
    cases.append(("packed fused", grn_jit(x, g, b), grn2d_ref(x, g, b)))

    # 2) non-divisor C, forced two-pass with a ragged last P-tile (mask path).
    x, g, b = make_case(k2, 2, 12, 12, 5)
    cases.append(("two-pass ragged",
                  grn_jit(x, g, b, p_tile=64, force_two_pass=True),
                  grn2d_ref(x, g, b)))

    # 3) C % 128 == 0 -> unpacked fused path in the native layout.
    x, g, b = make_case(k3, 2, 8, 8, 128)
    cases.append(("aligned fused", grn_jit(x, g, b), grn2d_ref(x, g, b)))

    # 4) packed two-pass (groups=16) with ragged tail + in-kernel epilogue.
    x, g, b = make_case(k4, 1, 20, 20, 8)
    cases.append(("packed two-pass",
                  grn_jit(x, g, b, p_tile=16, force_two_pass=True),
                  grn2d_ref(x, g, b)))

    for name, out, ref in cases:
        out = jax.block_until_ready(out)
        assert out.shape == ref.shape, f"{name}: shape mismatch"
        assert jnp.allclose(out, ref, atol=1e-4, rtol=1e-4), f"{name}: mismatch"

    print("KERNEL_OK")
</pallas_src>

<mosaic_0001>
module attributes {stable_mosaic.version = 11 : i64} {
  func.func @_grn_fused_kernel(%arg0: i32, %arg1: memref<1x8x128xf32, #tpu.memory_space<vmem>>, %arg2: memref<1x1x128xf32, #tpu.memory_space<vmem>>, %arg3: memref<1x1x128xf32, #tpu.memory_space<vmem>>, %arg4: memref<1x8x128xf32, #tpu.memory_space<vmem>>) attributes {dimension_semantics = [#tpu.dimension_semantics<parallel>], iteration_bounds = array<i64: 2>, scalar_prefetch = 0 : i64, scratch_operands = 0 : i64, tpu.core_type = #tpu.core_type<tc>, window_params = [{transform_indices = @transform_0, window_bounds = array<i64: 1, 8, 128>}, {pipeline_mode = #tpu.pipeline_mode<synchronous>, transform_indices = @transform_1, window_bounds = array<i64: 1, 1, 128>}, {pipeline_mode = #tpu.pipeline_mode<synchronous>, transform_indices = @transform_2, window_bounds = array<i64: 1, 1, 128>}, {transform_indices = @transform_3, window_bounds = array<i64: 1, 8, 128>}]} {
    %c0 = arith.constant 0 : index
    %c0_0 = arith.constant 0 : index
    %c0_1 = arith.constant 0 : index
    %0 = vector.load %arg1[%c0, %c0_0, %c0_1] : memref<1x8x128xf32, #tpu.memory_space<vmem>>, vector<1x8x128xf32>
    %1 = arith.mulf %0, %0 : vector<1x8x128xf32>
    %cst = arith.constant dense<0.000000e+00> : vector<1x128xf32>
    %2 = vector.multi_reduction <add>, %1, %cst [1] : vector<1x8x128xf32> to vector<1x128xf32>
    %3 = vector.shape_cast %2 : vector<1x128xf32> to vector<1x1x128xf32>
    %c0_2 = arith.constant 0 : index
    %c0_3 = arith.constant 0 : index
    %c0_4 = arith.constant 0 : index
    %4 = vector.load %arg2[%c0_2, %c0_3, %c0_4] : memref<1x1x128xf32, #tpu.memory_space<vmem>>, vector<1x1x128xf32>
    %5 = tpu.iota {dimensions = array<i32: 0>} : vector<128x128xi32>
    %c4_i32 = arith.constant 4 : i32
    %c0_i32 = arith.constant 0 : i32
    %6 = arith.cmpi eq, %c4_i32, %c0_i32 : i32
    %c1_i32 = arith.constant 1 : i32
    %7 = arith.select %6, %c1_i32, %c4_i32 : i32
    %8 = vector.broadcast %7 : i32 to vector<128x128xi32>
    %9 = arith.remsi %5, %8 : vector<128x128xi32>
    %c0_i32_5 = arith.constant 0 : i32
    %10 = vector.broadcast %c0_i32_5 : i32 to vector<128x128xi32>
    %11 = arith.cmpi ne, %9, %10 : vector<128x128xi32>
    %c0_i32_6 = arith.constant 0 : i32
    %12 = vector.broadcast %c0_i32_6 : i32 to vector<128x128xi32>
    %13 = arith.cmpi slt, %9, %12 : vector<128x128xi32>
    %c0_i32_7 = arith.constant 0 : i32
    %14 = arith.cmpi slt, %7, %c0_i32_7 : i32
    %15 = vector.broadcast %14 : i1 to vector<128x128xi1>
    %16 = vector.broadcast %15 : vector<128x128xi1> to vector<128x128xi1>
    %17 = arith.xori %13, %16 : vector<128x128xi1>
    %18 = arith.andi %17, %11 : vector<128x128xi1>
    %19 = vector.broadcast %7 : i32 to vector<128x128xi32>
    %20 = arith.addi %9, %19 : vector<128x128xi32>
    %21 = arith.select %18, %20, %9 : vector<128x128xi1>, vector<128x128xi32>
    %22 = tpu.iota {dimensions = array<i32: 1>} : vector<128x128xi32>
    %c4_i32_8 = arith.constant 4 : i32
    %c0_i32_9 = arith.constant 0 : i32
    %23 = arith.cmpi eq, %c4_i32_8, %c0_i32_9 : i32
    %c1_i32_10 = arith.constant 1 : i32
    %24 = arith.select %23, %c1_i32_10, %c4_i32_8 : i32
    %25 = vector.broadcast %24 : i32 to vector<128x128xi32>
    %26 = arith.remsi %22, %25 : vector<128x128xi32>
    %c0_i32_11 = arith.constant 0 : i32
    %27 = vector.broadcast %c0_i32_11 : i32 to vector<128x128xi32>
    %28 = arith.cmpi ne, %26, %27 : vector<128x128xi32>
    %c0_i32_12 = arith.constant 0 : i32
    %29 = vector.broadcast %c0_i32_12 : i32 to vector<128x128xi32>
    %30 = arith.cmpi slt, %26, %29 : vector<128x128xi32>
    %c0_i32_13 = arith.constant 0 : i32
    %31 = arith.cmpi slt, %24, %c0_i32_13 : i32
    %32 = vector.broadcast %31 : i1 to vector<128x128xi1>
    %33 = vector.broadcast %32 : vector<128x128xi1> to vector<128x128xi1>
    %34 = arith.xori %30, %33 : vector<128x128xi1>
    %35 = arith.andi %34, %28 : vector<128x128xi1>
    %36 = vector.broadcast %24 : i32 to vector<128x128xi32>
    %37 = arith.addi %26, %36 : vector<128x128xi32>
    %38 = arith.select %35, %37, %26 : vector<128x128xi1>, vector<128x128xi32>
    %39 = arith.cmpi eq, %21, %38 : vector<128x128xi32>
    %40 = arith.extui %39 : vector<128x128xi1> to vector<128x128xi32>
    %41 = arith.sitofp %40 : vector<128x128xi32> to vector<128x128xf32>
    %42 = vector.shape_cast %3 : vector<1x1x128xf32> to vector<1x128xf32>
    %cst_14 = arith.constant dense<0.000000e+00> : vector<1x128xf32>
    %43 = tpu.matmul %42, %41, %cst_14 {dimension_numbers = #tpu.dot_dimension_numbers<[1], [0], [0], [1], [0, 0, 1, 1], [], []>} : vector<1x128xf32>, vector<128x128xf32>, vector<1x128xf32> -> vector<1x128xf32>
    %44 = vector.shape_cast %43 : vector<1x128xf32> to vector<1x1x128xf32>
    %45 = math.sqrt %44 : vector<1x1x128xf32>
    %cst_15 = arith.constant dense<0.000000e+00> : vector<1x1xf32>
    %46 = vector.multi_reduction <add>, %45, %cst_15 [2] : vector<1x1x128xf32> to vector<1x1xf32>
    %47 = vector.shape_cast %46 : vector<1x1xf32> to vector<1x1x1xf32>
    %cst_16 = arith.constant 1.280000e+02 : f32
    %48 = vector.broadcast %cst_16 : f32 to vector<1x1x1xf32>
    %49 = arith.divf %47, %48 : vector<1x1x1xf32>
    %cst_17 = arith.constant 9.99999997E-7 : f32
    %50 = vector.broadcast %cst_17 : f32 to vector<1x1x1xf32>
    %51 = arith.addf %49, %50 : vector<1x1x1xf32>
    %52 = tpu.reciprocal %51 : vector<1x1x1xf32> -> vector<1x1x1xf32>
    %53 = vector.broadcast %52 : vector<1x1x1xf32> to vector<1x1x128xf32>
    %54 = arith.mulf %45, %53 : vector<1x1x128xf32>
    %55 = arith.mulf %4, %54 : vector<1x1x128xf32>
    %cst_18 = arith.constant 1.000000e+00 : f32
    %56 = vector.broadcast %cst_18 : f32 to vector<1x1x128xf32>
    %57 = arith.addf %55, %56 : vector<1x1x128xf32>
    %c0_19 = arith.constant 0 : index
    %c0_20 = arith.constant 0 : index
    %c0_21 = arith.constant 0 : index
    %58 = vector.load %arg3[%c0_19, %c0_20, %c0_21] : memref<1x1x128xf32, #tpu.memory_space<vmem>>, vector<1x1x128xf32>
    %c0_22 = arith.constant 0 : index
    %c0_23 = arith.constant 0 : index
    %c0_24 = arith.constant 0 : index
    %59 = vector.load %arg1[%c0_22, %c0_23, %c0_24] : memref<1x8x128xf32, #tpu.memory_space<vmem>>, vector<1x8x128xf32>
    %60 = vector.broadcast %57 : vector<1x1x128xf32> to vector<1x8x128xf32>
    %61 = arith.mulf %59, %60 : vector<1x8x128xf32>
    %62 = vector.broadcast %58 : vector<1x1x128xf32> to vector<1x8x128xf32>
    %63 = arith.addf %61, %62 : vector<1x8x128xf32>
    %c0_25 = arith.constant 0 : index
    %c0_26 = arith.constant 0 : index
    %c0_27 = arith.constant 0 : index
    %64 = vector.load %arg4[%c0_25, %c0_26, %c0_27] : memref<1x8x128xf32, #tpu.memory_space<vmem>>, vector<1x8x128xf32>
    tpu.vector_store %arg4[%c0_25, %c0_26, %c0_27], %63 {strides = array<i32>} : memref<1x8x128xf32, #tpu.memory_space<vmem>>, vector<1x8x128xf32>,
    return
  }
  func.func @transform_0(%arg0: i32) -> (i32, i32, i32) {
    %c0_i32 = arith.constant 0 : i32
    %c0_i32_0 = arith.constant 0 : i32
    %c0_i32_1 = arith.constant 0 : i32
    return %arg0, %c0_i32, %c0_i32_0 : i32, i32, i32
  }
  func.func @transform_1(%arg0: i32) -> (i32, i32, i32) {
    %c0_i32 = arith.constant 0 : i32
    %c0_i32_0 = arith.constant 0 : i32
    %c0_i32_1 = arith.constant 0 : i32
    %c0_i32_2 = arith.constant 0 : i32
    return %c0_i32, %c0_i32_0, %c0_i32_1 : i32, i32, i32
  }
  func.func @transform_2(%arg0: i32) -> (i32, i32, i32) {
    %c0_i32 = arith.constant 0 : i32
    %c0_i32_0 = arith.constant 0 : i32
    %c0_i32_1 = arith.constant 0 : i32
    %c0_i32_2 = arith.constant 0 : i32
    return %c0_i32, %c0_i32_0, %c0_i32_1 : i32, i32, i32
  }
  func.func @transform_3(%arg0: i32) -> (i32, i32, i32) {
    %c0_i32 = arith.constant 0 : i32
    %c0_i32_0 = arith.constant 0 : i32
    %c0_i32_1 = arith.constant 0 : i32
    return %arg0, %c0_i32, %c0_i32_0 : i32, i32, i32
  }
}

</mosaic_0001>

<bundles_post_ra>
// kernel: grn2d.1
= control target key start
LH: loop header
LB: loop body
LE: loop exit
PB: predicated region body
PF: predicated region fallthrough
CT: control target
= control target key end

     0   :  { %s743_s12 = smov 0   ;;  %s848_s0 = inlined_call_operand.vmem [shape: f32[2,8,128], index: 0, kind: input, shape index: {}]   ;;  %s849_s1 = inlined_call_operand.vmem [shape: f32[1,1,128], index: 1, kind: input, shape index: {}]   ;;  %s850_s2 = inlined_call_operand.vmem [shape: f32[1,1,128], index: 2, kind: input, shape index: {}]   ;;  %s851_s3 = inlined_call_operand.vmem [shape: f32[2,8,128], index: 3, kind: output, shape index: {}]  }
   0x1 LB: > { %s603_s13 = sadd.s32 4294967295, %s718_s12   ;;  %p607_p0 = scmp.ge.s32.totalorder %s718_s12, 1  ;;  %s718_s12 = sphi %s743_s12, %s13_s12  }
   0x2   : > { %p136_p1 = scmp.lt.s32.totalorder %s718_s12, 3 }
   0x4   : > { %p137_p2 = pnand %p607_p0, %p136_p1 }
   0x5   : > { %p158_p3 = scmp.lt.s32.totalorder (!%p137_p2), %s603_s13, 1 }
   0x6   : > { %140 = sbr.rel (%p137_p2) target bundleno = 432 (0x1b0), region = 32 }
   0xb   : > { %v175_v0 = vlaneseq  ;;  %v720_v1 = vmov 0.0   ;;  %vm721_vm0 = vmmov 0   ;;  %s853_s13 = smov (!%p158_p3, %s603_s13), 1  ;;  %v722_v15 = vmov 1.0   ;;  %v174_v57 = vld [vmem:[%s849_s1] sm:$0x1] }
   0xc   : > { %662 = vmatprep.subr.mxu0 %v720_v1  ;;  %694 = vmatprep.mubr.msk.f32.mxu0 %vm721_vm0, %v720_v1  ;;  %s608_s14 = sshll.u32 %s853_s13, 3  ;;  %v642_v63 = vld [vmem:[%s850_s2] ss:$0 sm:$0xff] }
   0xd   : > { %v753_v2 = vshrl.u32 %v175_v0, 7  ;;  %v385_v3 = vand.u32 127, %v175_v0  ;;  %s161_s17 = scalar_lea.vmem %s848_s0, %s608_s14  ;;  %s165_s24 = scalar_lea.vmem %s851_s3, %s608_s14 }
   0xe   : > { %v782_v20 = vld [vmem:[%s161_s17] sm:$0xff] }
   0xf   : > { %v191_v4 = vadd.s32 120, %v753_v2  ;;  %v758_v5 = vand.u32 3, %v385_v3  ;;  %v190_v6 = vadd.s32 112, %v753_v2  ;;  %v189_v7 = vadd.s32 104, %v753_v2 }
  0x10   : > { %v188_v8 = vadd.s32 96, %v753_v2  ;;  %v187_v12 = vadd.s32 88, %v753_v2  ;;  %v186_v14 = vadd.s32 80, %v753_v2  ;;  %v185_v17 = vadd.s32 72, %v753_v2 }
  0x11   : > { %v301_v9 = vand.u32 3, %v191_v4  ;;  %v294_v10 = vand.u32 3, %v190_v6  ;;  %v287_v11 = vand.u32 3, %v189_v7  ;;  %v184_v19 = vadd.s32 64, %v753_v2 }
  0x12   : > { %v280_v13 = vand.u32 3, %v188_v8  ;;  %v273_v16 = vand.u32 3, %v187_v12  ;;  %v266_v18 = vand.u32 3, %v186_v14  ;;  %v259_v21 = vand.u32 3, %v185_v17 }
  0x13   : > { %vm413_vm1 = vcmp.eq.s32.totalorder %v301_v9, %v758_v5  ;;  %vm412_vm2 = vcmp.eq.s32.totalorder %v294_v10, %v758_v5  ;;  %vm411_vm3 = vcmp.eq.s32.totalorder %v287_v11, %v758_v5  ;;  %v183_v22 = vadd.s32 56, %v753_v2 }
  0x14   : > { %663 = vmatpush3.msk.msra.mxu0 %vm413_vm1, %v722_v15  ;;  %vm410_vm4 = vcmp.eq.s32.totalorder %v280_v13, %v758_v5  ;;  %vm409_vm5 = vcmp.eq.s32.totalorder %v273_v16, %v758_v5  ;;  %vm408_vm6 = vcmp.eq.s32.totalorder %v266_v18, %v758_v5  ;;  %v252_v23 = vand.u32 3, %v184_v19 }
  0x15   : > { %664 = vmatprep.subr.mxu0 %v720_v1  ;;  %v182_v24 = vadd.s32 48, %v753_v2  ;;  %v167_v25 = vmul.f32 %v782_v20, %v782_v20  ;;  %vm407_vm7 = vcmp.eq.s32.totalorder %v259_v21, %v758_v5  ;;  %v245_v26 = vand.u32 3, %v183_v22 }
  0x16   : > { %665 = vmatpush3.msk.msra.mxu0 %vm412_vm2, %v722_v15  ;;  %v181_v27 = vadd.s32 40, %v753_v2  ;;  %vm406_vm8 = vcmp.eq.s32.totalorder %v252_v23, %v758_v5  ;;  %v180_v30 = vadd.s32 32, %v753_v2  ;;  %v179_v33 = vadd.s32 24, %v753_v2 }
  0x17   : > { %666 = vmatprep.subr.mxu0 %v720_v1  ;;  %v168_v28 = vrot.slane %v167_v25, 4  ;;  %v238_v29 = vand.u32 3, %v182_v24  ;;  %vm405_vm9 = vcmp.eq.s32.totalorder %v245_v26, %v758_v5  ;;  %v178_v35 = vadd.s32 16, %v753_v2 }
  0x18   : > { %667 = vmatpush3.msk.msra.mxu0 %vm411_vm3, %v722_v15  ;;  %v231_v32 = vand.u32 3, %v181_v27  ;;  %v224_v34 = vand.u32 3, %v180_v30  ;;  %v217_v37 = vand.u32 3, %v179_v33  ;;  %v177_v38 = vadd.s32 8, %v753_v2 }
  0x19   : > { %668 = vmatprep.subr.mxu0 %v720_v1  ;;  %v169_v31 = vadd.f32 %v168_v28, %v167_v25  ;;  %vm404_vm10 = vcmp.eq.s32.totalorder %v238_v29, %v758_v5  ;;  %v210_v39 = vand.u32 3, %v178_v35  ;;  %v196_v42 = vand.u32 3, %v753_v2 }
  0x1a   : > { %669 = vmatpush3.msk.msra.mxu0 %vm410_vm4, %v722_v15  ;;  %vm403_vm11 = vcmp.eq.s32.totalorder %v231_v32, %v758_v5  ;;  %vm402_vm12 = vcmp.eq.s32.totalorder %v224_v34, %v758_v5  ;;  %vm401_vm13 = vcmp.eq.s32.totalorder %v217_v37, %v758_v5  ;;  %v203_v41 = vand.u32 3, %v177_v38 }
  0x1b   : > { %670 = vmatprep.subr.mxu0 %v720_v1  ;;  %v170_v36 = vrot.slane %v169_v31, 2  ;;  %vm400_vm14 = vcmp.eq.s32.totalorder %v210_v39, %v758_v5  ;;  %vm398_vm0 = vcmp.eq.s32.totalorder %v196_v42, %v758_v5  ;;  %vm523_vm2 = vcmask 1040384  }
  0x1c   : > { %671 = vmatpush3.msk.msra.mxu0 %vm409_vm5, %v722_v15  ;;  %vm399_vm15 = vcmp.eq.s32.totalorder %v203_v41, %v758_v5  ;;  %v538_v60 = vsub.s32 0, %v753_v2 }
  0x1d   : > { %672 = vmatprep.subr.mxu0 %v720_v1  ;;  %v171_v40 = vadd.f32 %v170_v36, %v169_v31 }
  0x1e   : > { %673 = vmatpush3.msk.msra.mxu0 %vm408_vm6, %v722_v15 }
  0x1f   : > { %674 = vmatprep.subr.mxu0 %v720_v1  ;;  %v172_v43 = vrot.slane %v171_v40, 1 }
  0x20   : > { %675 = vmatpush3.msk.msra.mxu0 %vm407_vm7, %v722_v15 }
  0x21   : > { %676 = vmatprep.subr.mxu0 %v720_v1  ;;  %v173_v44 = vadd.f32 %v172_v43, %v171_v40 }
  0x22   : > { %677 = vmatpush3.msk.msra.mxu0 %vm406_vm8, %v722_v15 }
  0x23   : > { %678 = vmatprep.subr.mxu0 %v720_v1 }
  0x24   : > { %679 = vmatpush3.msk.msra.mxu0 %vm405_vm9, %v722_v15 }
  0x25   : > { %680 = vmatprep.subr.mxu0 %v720_v1 }
  0x26   : > { %681 = vmatpush3.msk.msra.mxu0 %vm404_vm10, %v722_v15 }
  0x27   : > { %682 = vmatprep.subr.mxu0 %v720_v1 }
  0x28   : > { %683 = vmatpush3.msk.msra.mxu0 %vm403_vm11, %v722_v15 }
  0x29   : > { %684 = vmatprep.subr.mxu0 %v720_v1 }
  0x2a   : > { %685 = vmatpush3.msk.msra.mxu0 %vm402_vm12, %v722_v15 }
  0x2b   : > { %686 = vmatprep.subr.mxu0 %v720_v1 }
  0x2c   : > { %687 = vmatpush3.msk.msra.mxu0 %vm401_vm13, %v722_v15 }
  0x2d   : > { %688 = vmatprep.subr.mxu0 %v720_v1 }
  0x2e   : > { %689 = vmatpush3.msk.msra.mxu0 %vm400_vm14, %v722_v15 }
  0x2f   : > { %690 = vmatprep.subr.mxu0 %v720_v1 }
  0x30   : > { %691 = vmatpush3.msk.msra.mxu0 %vm399_vm15, %v722_v15 }
  0x31   : > { %692 = vmatprep.subr.mxu0 %v720_v1 }
  0x32   : > { %693 = vmatpush3.msk.msra.mxu0 %vm398_vm0, %v722_v15 }
  0x33   : > { %695 = vmatmul.mubr.f32.vlgmr.msra.gmra.mxu0 %v173_v44 }
  0xf3   : > { %v512_v45 = vpop.f32.mrf.mxu0 }
  0xf4   : > { %708 = vrsqrt.f32 %v512_v45  ;;  %vm518_vm1 = vcmp.eq.f32.partialorder %v512_v45, inf  ;;  %v521_v49 = vand.u32 2147483648, %v512_v45  ;;  %vm520_vm3 = vcmp.eq.f32.partialorder %v512_v45, 0.0 }
  0xf5   : > { %v696_v46 = vpop.f32.mrf.mxu0 }
 0x101   : > { %v709_v47 = vpop.eup %708 }
 0x102   : > { %v517_v48 = vmul.f32 %v709_v47, %v512_v45 }
 0x104   : > { %v519_v50 = vsel %vm518_vm1, %v512_v45, %v517_v48 }
 0x105   : > { %v522_v51 = vsel %vm520_vm3, %v521_v49, %v519_v50 }
 0x106   : > { %v524_v52 = vsel %vm523_vm2, %v522_v51, 0.0 }
 0x107   : > { %525 = vadd.xlane.f32.xlu0 %v524_v52 }
 0x190   : > { %v526_v53 = vpop.xlane.xlu0 %525 }
 0x191   : > { %v528_v54 = vmul.f32 0.0078125, %v526_v53 }
 0x193   : > { %v529_v55 = vadd.f32 1e-06, %v528_v54 }
 0x195   : > { %710 = vrcp.f32 %v529_v55 }
 0x1a2   : > { %v711_v56 = vpop.eup %710 }
 0x1a3   : > { %v531_v58 = vmul.f32 %v711_v56, %v522_v51 }
 0x1a5   : > { %v532_v59 = vmul.f32 %v531_v58, %v174_v57 }
 0x1a7   : > { %v533_v61 = vadd.f32 1.0, %v532_v59 }
 0x1a9   : > { %v539_v62 = vrot.slane %v533_v61, %v538_v60 }
 0x1ab   : > { %v541_v0 = vmul.f32 %v539_v62, %v782_v20 }
 0x1ad   : > { %v548_v1 = vadd.f32 %v642_v63, %v541_v0 }
 0x1af   : > { %549 = vst [vmem:[%s165_s24] sm:$0xff] %v548_v1 }
 0x1b0 PF: > { %s13_s12 = sadd.s32 1, %s718_s12  }
 0x1b1   : > { %p10_p4 = scmp.ge.s32.totalorder %s13_s12, 4  }
 0x1b3   :  { %12 = sbr.rel (!%p10_p4) target bundleno = 1 (0x1), region = 62 }

</bundles_post_ra>
